<compile_context>
chip_gen: v7x
topology: tpu7x:2x2x1
jax: 0.10.0
libtpu: 0.0.40
codegen_flags: <defaults>
</compile_context>

<pallas_src>
import functools

import jax
import jax.numpy as jnp
from jax.experimental import pallas as pl
from jax.experimental.pallas import tpu as pltpu


def _round_up(x, m):
    return (x + m - 1) // m * m


# ----------------------------- Pallas kernel ------------------------------- #
def _glu_ffn_kernel(x_ref, wgv_ref, bgv_ref, wo_ref, bo_ref, o_ref, acc_ref, *, tf):
    """One (token-tile i, ffn-tile j) grid step of the fused SwiGLU FFN."""
    j = pl.program_id(1)

    @pl.when(j == 0)
    def _():
        acc_ref[...] = jnp.zeros_like(acc_ref)

    # Fused gate|value projection: one MXU matmul with N = 2*tf.
    gv = jnp.dot(x_ref[...], wgv_ref[...],
                 preferred_element_type=jnp.float32) + bgv_ref[...]   # (tm, 2tf) f32
    g = gv[:, :tf]        # lane-aligned split (tf is a multiple of 128)
    v = gv[:, tf:]
    h = (g * jax.nn.sigmoid(g)) * v                                   # SwiGLU, f32

    # Output projection for this ffn tile, accumulated over j in f32 VMEM.
    acc_ref[...] += jnp.dot(h.astype(wo_ref.dtype), wo_ref[...],
                            preferred_element_type=jnp.float32)

    @pl.when(j == pl.num_programs(1) - 1)
    def _():
        o_ref[...] = (acc_ref[...] + bo_ref[...]).astype(o_ref.dtype)


def _glu_ffn_pallas(x, wgv, bgv, wo, bo, *, tm, tf, out_dtype):
    T, D = x.shape
    F = wo.shape[0]
    grid = (T // tm, F // tf)
    return pl.pallas_call(
        functools.partial(_glu_ffn_kernel, tf=tf),
        out_shape=jax.ShapeDtypeStruct((T, D), out_dtype),
        grid_spec=pltpu.PrefetchScalarGridSpec(
            num_scalar_prefetch=0,
            grid=grid,
            in_specs=[
                pl.BlockSpec((tm, D), lambda i, j: (i, 0)),        # x (resident over j)
                pl.BlockSpec((D, 2 * tf), lambda i, j: (0, j)),    # [wg_j | wv_j]
                pl.BlockSpec((1, 2 * tf), lambda i, j: (0, j)),    # [bg_j | bv_j]
                pl.BlockSpec((tf, D), lambda i, j: (j, 0)),        # wo_j
                pl.BlockSpec((1, D), lambda i, j: (0, 0)),         # bo
            ],
            out_specs=pl.BlockSpec((tm, D), lambda i, j: (i, 0)),
            scratch_shapes=[pltpu.VMEM((tm, D), jnp.float32)],
        ),
        compiler_params=pltpu.CompilerParams(
            # Token tiles are independent (megacore-shardable on v7x); the ffn
            # axis is a reduction into the VMEM accumulator -> arbitrary, last.
            dimension_semantics=("parallel", "arbitrary"),
            # Headroom for bigger weight tiles at production D/F while staying
            # ~25% under the 64 MiB v7x physical VMEM.
            vmem_limit_bytes=48 * 1024 * 1024,
        ),
    )(x, wgv, bgv, wo, bo)


# --------------------------- weight packing (host) -------------------------- #
def pack_glu_ffn_params(wg, bg, wv, bv, wo, bo, *, tf):
    """Interleave gate/value weights per ffn tile: tile j = [wg_j | wv_j].

    Weights are stored in bf16 (2x MXU throughput, half HBM/VMEM traffic);
    biases stay f32 since they are added to the f32 accumulator.
    """
    D, F = wg.shape
    assert F % tf == 0, "ffn_dim must be a multiple of the ffn tile size"
    ft = F // tf
    wgv = jnp.concatenate(
        [wg.reshape(D, ft, tf), wv.reshape(D, ft, tf)], axis=-1
    ).reshape(D, 2 * F).astype(jnp.bfloat16)
    bgv = jnp.concatenate(
        [bg.reshape(1, ft, tf), bv.reshape(1, ft, tf)], axis=-1
    ).reshape(1, 2 * F).astype(jnp.float32)
    return dict(
        wgv=wgv,
        bgv=bgv,
        wo=wo.astype(jnp.bfloat16),
        bo=bo.reshape(1, D).astype(jnp.float32),
        tf=tf,
    )


# ------------------------------ forward (glue) ------------------------------ #
def glu_ffn_forward(x, params, *, tm_max=256):
    """GluFFN.forward: (B, S, D) -> (B, S, D). SwiGLU activation + wo projection."""
    B, S, D = x.shape
    x_flat = x.reshape(-1, D)
    T = x_flat.shape[0]
    tf = params["tf"]

    tm = min(tm_max, _round_up(T, 8))
    Tp = _round_up(T, tm)
    if Tp != T:
        x_flat = jnp.pad(x_flat, ((0, Tp - T), (0, 0)))

    y = _glu_ffn_pallas(
        x_flat.astype(jnp.bfloat16),               # bf16 MXU inputs, f32 accumulate
        params["wgv"], params["bgv"], params["wo"], params["bo"],
        tm=tm, tf=tf, out_dtype=jnp.float32,
    )
    return y[:T].reshape(B, S, D)


# ------------------------- plain-JAX reference ------------------------------ #
def ref_glu_ffn(x_flat, wg, bg, wv, bv, wo, bo):
    """Reference with the same bf16-input / f32-accumulate numerics."""
    xb = x_flat.astype(jnp.bfloat16)
    g = jnp.dot(xb, wg.astype(jnp.bfloat16),
                preferred_element_type=jnp.float32) + bg
    v = jnp.dot(xb, wv.astype(jnp.bfloat16),
                preferred_element_type=jnp.float32) + bv
    h = (g * jax.nn.sigmoid(g)) * v
    y = jnp.dot(h.astype(jnp.bfloat16), wo.astype(jnp.bfloat16),
                preferred_element_type=jnp.float32) + bo
    return y


# --------------------------------- main ------------------------------------ #
if __name__ == "__main__":
    # GluFFN config: model_dim=128, ffn_dim=256, bias=True, activation='swiglu'.
    # Dims chosen as multiples of 128 so all loads/stores are full-lane.
    B, S, D, F = 2, 8, 128, 256
    tf = 128

    key = jax.random.PRNGKey(0)
    kx, kg, kbg, kv, kbv, ko, kbo = jax.random.split(key, 7)
    x = jax.random.normal(kx, (B, S, D), jnp.float32)
    s_in = 1.0 / jnp.sqrt(D)
    wg = jax.random.normal(kg, (D, F), jnp.float32) * s_in
    bg = jax.random.normal(kbg, (F,), jnp.float32) * 0.02
    wv = jax.random.normal(kv, (D, F), jnp.float32) * s_in
    bv = jax.random.normal(kbv, (F,), jnp.float32) * 0.02
    wo = jax.random.normal(ko, (F, D), jnp.float32) / jnp.sqrt(F)
    bo = jax.random.normal(kbo, (D,), jnp.float32) * 0.02

    params = pack_glu_ffn_params(wg, bg, wv, bv, wo, bo, tf=tf)

    out = glu_ffn_forward(x, params)
    out = jax.block_until_ready(out)

    ref = ref_glu_ffn(x.reshape(-1, D), wg, bg, wv, bv, wo, bo).reshape(B, S, D)
    assert out.shape == (B, S, D)
    max_err = float(jnp.max(jnp.abs(out - ref)))
    assert jnp.allclose(out, ref, atol=2e-2, rtol=2e-2), (
        f"mismatch vs JAX reference, max abs err {max_err}")

    print("KERNEL_OK")
</pallas_src>

<mosaic_0001>
module attributes {stable_mosaic.version = 11 : i64} {
  func.func @_glu_ffn_kernel(%arg0: i32, %arg1: i32, %arg2: memref<16x128xbf16, #tpu.memory_space<vmem>>, %arg3: memref<128x256xbf16, #tpu.memory_space<vmem>>, %arg4: memref<1x256xf32, #tpu.memory_space<vmem>>, %arg5: memref<128x128xbf16, #tpu.memory_space<vmem>>, %arg6: memref<1x128xf32, #tpu.memory_space<vmem>>, %arg7: memref<16x128xf32, #tpu.memory_space<vmem>>, %arg8: memref<16x128xf32, #tpu.memory_space<vmem>>) attributes {dimension_semantics = [#tpu.dimension_semantics<parallel>, #tpu.dimension_semantics<arbitrary>], iteration_bounds = array<i64: 1, 2>, scalar_prefetch = 0 : i64, scratch_operands = 1 : i64, tpu.core_type = #tpu.core_type<tc>, window_params = [{transform_indices = @transform_0, window_bounds = array<i64: 16, 128>}, {transform_indices = @transform_1, window_bounds = array<i64: 128, 256>}, {transform_indices = @transform_2, window_bounds = array<i64: 1, 256>}, {transform_indices = @transform_3, window_bounds = array<i64: 128, 128>}, {pipeline_mode = #tpu.pipeline_mode<synchronous>, transform_indices = @transform_4, window_bounds = array<i64: 1, 128>}, {transform_indices = @transform_5, window_bounds = array<i64: 16, 128>}]} {
    %c0_i32 = arith.constant 0 : i32
    %0 = arith.cmpi eq, %arg1, %c0_i32 : i32
    %1 = arith.extui %0 : i1 to i32
    %c0_i32_0 = arith.constant 0 : i32
    %2 = arith.cmpi ne, %1, %c0_i32_0 : i32
    scf.if %2 {
      %cst_15 = arith.constant 0.000000e+00 : f32
      %27 = vector.broadcast %cst_15 : f32 to vector<16x128xf32>
      %c0_16 = arith.constant 0 : index
      %c0_17 = arith.constant 0 : index
      %28 = vector.load %arg8[%c0_16, %c0_17] : memref<16x128xf32, #tpu.memory_space<vmem>>, vector<16x128xf32>
      tpu.vector_store %arg8[%c0_16, %c0_17], %27 {strides = array<i32>} : memref<16x128xf32, #tpu.memory_space<vmem>>, vector<16x128xf32>,
    } else {
    }
    %c0 = arith.constant 0 : index
    %c0_1 = arith.constant 0 : index
    %3 = vector.load %arg2[%c0, %c0_1] : memref<16x128xbf16, #tpu.memory_space<vmem>>, vector<16x128xbf16>
    %c0_2 = arith.constant 0 : index
    %c0_3 = arith.constant 0 : index
    %4 = vector.load %arg3[%c0_2, %c0_3] : memref<128x256xbf16, #tpu.memory_space<vmem>>, vector<128x256xbf16>
    %cst = arith.constant dense<0.000000e+00> : vector<16x256xf32>
    %5 = tpu.matmul %3, %4, %cst {dimension_numbers = #tpu.dot_dimension_numbers<[1], [0], [0], [1], [0, 0, 1, 1], [], []>} : vector<16x128xbf16>, vector<128x256xbf16>, vector<16x256xf32> -> vector<16x256xf32>
    %c0_4 = arith.constant 0 : index
    %c0_5 = arith.constant 0 : index
    %6 = vector.load %arg4[%c0_4, %c0_5] : memref<1x256xf32, #tpu.memory_space<vmem>>, vector<1x256xf32>
    %7 = vector.broadcast %6 : vector<1x256xf32> to vector<16x256xf32>
    %8 = arith.addf %5, %7 : vector<16x256xf32>
    %9 = vector.extract_strided_slice %8 {offsets = [0, 0], sizes = [16, 128], strides = [1, 1]} : vector<16x256xf32> to vector<16x128xf32>
    %10 = vector.extract_strided_slice %8 {offsets = [0, 128], sizes = [16, 128], strides = [1, 1]} : vector<16x256xf32> to vector<16x128xf32>
    %11 = arith.negf %9 : vector<16x128xf32>
    %12 = math.exp %11 : vector<16x128xf32>
    %cst_6 = arith.constant 1.000000e+00 : f32
    %13 = vector.broadcast %cst_6 : f32 to vector<16x128xf32>
    %14 = arith.addf %13, %12 : vector<16x128xf32>
    %15 = arith.divf %13, %14 : vector<16x128xf32>
    %16 = arith.mulf %9, %15 : vector<16x128xf32>
    %17 = arith.mulf %16, %10 : vector<16x128xf32>
    %c0_7 = arith.constant 0 : index
    %c0_8 = arith.constant 0 : index
    %18 = vector.load %arg8[%c0_7, %c0_8] : memref<16x128xf32, #tpu.memory_space<vmem>>, vector<16x128xf32>
    %19 = arith.truncf %17 : vector<16x128xf32> to vector<16x128xbf16>
    %c0_9 = arith.constant 0 : index
    %c0_10 = arith.constant 0 : index
    %20 = vector.load %arg5[%c0_9, %c0_10] : memref<128x128xbf16, #tpu.memory_space<vmem>>, vector<128x128xbf16>
    %cst_11 = arith.constant dense<0.000000e+00> : vector<16x128xf32>
    %21 = tpu.matmul %19, %20, %cst_11 {dimension_numbers = #tpu.dot_dimension_numbers<[1], [0], [0], [1], [0, 0, 1, 1], [], []>} : vector<16x128xbf16>, vector<128x128xbf16>, vector<16x128xf32> -> vector<16x128xf32>
    %22 = arith.addf %18, %21 : vector<16x128xf32>
    %c0_12 = arith.constant 0 : index
    %c0_13 = arith.constant 0 : index
    %23 = vector.load %arg8[%c0_12, %c0_13] : memref<16x128xf32, #tpu.memory_space<vmem>>, vector<16x128xf32>
    tpu.vector_store %arg8[%c0_12, %c0_13], %22 {strides = array<i32>} : memref<16x128xf32, #tpu.memory_space<vmem>>, vector<16x128xf32>,
    %c1_i32 = arith.constant 1 : i32
    %24 = arith.cmpi eq, %arg1, %c1_i32 : i32
    %25 = arith.extui %24 : i1 to i32
    %c0_i32_14 = arith.constant 0 : i32
    %26 = arith.cmpi ne, %25, %c0_i32_14 : i32
    scf.if %26 {
      %c0_15 = arith.constant 0 : index
      %c0_16 = arith.constant 0 : index
      %27 = vector.load %arg8[%c0_15, %c0_16] : memref<16x128xf32, #tpu.memory_space<vmem>>, vector<16x128xf32>
      %c0_17 = arith.constant 0 : index
      %c0_18 = arith.constant 0 : index
      %28 = vector.load %arg6[%c0_17, %c0_18] : memref<1x128xf32, #tpu.memory_space<vmem>>, vector<1x128xf32>
      %29 = vector.broadcast %28 : vector<1x128xf32> to vector<16x128xf32>
      %30 = arith.addf %27, %29 : vector<16x128xf32>
      %c0_19 = arith.constant 0 : index
      %c0_20 = arith.constant 0 : index
      %31 = vector.load %arg7[%c0_19, %c0_20] : memref<16x128xf32, #tpu.memory_space<vmem>>, vector<16x128xf32>
      tpu.vector_store %arg7[%c0_19, %c0_20], %30 {strides = array<i32>} : memref<16x128xf32, #tpu.memory_space<vmem>>, vector<16x128xf32>,
    } else {
    }
    return
  }
  func.func @transform_0(%arg0: i32, %arg1: i32) -> (i32, i32) {
    %c0_i32 = arith.constant 0 : i32
    %c0_i32_0 = arith.constant 0 : i32
    return %arg0, %c0_i32 : i32, i32
  }
  func.func @transform_1(%arg0: i32, %arg1: i32) -> (i32, i32) {
    %c0_i32 = arith.constant 0 : i32
    %c0_i32_0 = arith.constant 0 : i32
    return %c0_i32, %arg1 : i32, i32
  }
  func.func @transform_2(%arg0: i32, %arg1: i32) -> (i32, i32) {
    %c0_i32 = arith.constant 0 : i32
    %c0_i32_0 = arith.constant 0 : i32
    return %c0_i32, %arg1 : i32, i32
  }
  func.func @transform_3(%arg0: i32, %arg1: i32) -> (i32, i32) {
    %c0_i32 = arith.constant 0 : i32
    %c0_i32_0 = arith.constant 0 : i32
    return %arg1, %c0_i32 : i32, i32
  }
  func.func @transform_4(%arg0: i32, %arg1: i32) -> (i32, i32) {
    %c0_i32 = arith.constant 0 : i32
    %c0_i32_0 = arith.constant 0 : i32
    %c0_i32_1 = arith.constant 0 : i32
    return %c0_i32, %c0_i32_0 : i32, i32
  }
  func.func @transform_5(%arg0: i32, %arg1: i32) -> (i32, i32) {
    %c0_i32 = arith.constant 0 : i32
    %c0_i32_0 = arith.constant 0 : i32
    return %arg0, %c0_i32 : i32, i32
  }
}

</mosaic_0001>

<bundles_post_ra>
// kernel: tpu_custom_call.1
= control target key start
LH: loop header
LB: loop body
LE: loop exit
PB: predicated region body
PF: predicated region fallthrough
CT: control target
= control target key end

     0   :  { %s1461_s0 = inlined_call_operand.hbm [shape: bf16[16,128], index: 0, kind: input, shape index: {}]   ;;  %s1462_s1 = inlined_call_operand.hbm [shape: bf16[128,512], index: 1, kind: input, shape index: {}]   ;;  %s1463_s2 = inlined_call_operand.vmem [shape: f32[1,512], index: 2, kind: input, shape index: {}]   ;;  %s1464_s3 = inlined_call_operand.hbm [shape: bf16[256,128], index: 3, kind: input, shape index: {}]   ;;  %s1465_s4 = inlined_call_operand.vmem [shape: f32[1,128], index: 4, kind: input, shape index: {}]   ;;  %s1466_s5 = inlined_call_operand.hbm [shape: f32[16,128], index: 5, kind: output, shape index: {}]  }
   0x1   :  { %1473 = sst [smem:[#allocation13_spill]] %s1462_s1 }
   0x2   :  { %10 = vsyncpa [#allocation4], 0 }
   0x3   :  { %11 = vsyncpa [#allocation7], 0 }
   0x4   :  { %13 = vsyncpa [#allocation7 + $0x1], 0 }
   0x5   :  { %14 = vsyncpa [#allocation5], 0  ;;  %s1187_s18 = smov 0   ;;  %s1189_s19 = smov 0  }
   0x6   :  { %s1191_s20 = smov 0   ;;  %s1193_s21 = smov 0  }
   0x7   :  { %s1195_s22 = smov 0   ;;  %s1197_s23 = smov 0  }
   0x8 LB: > { %s29_s24 = sadd.s32 1, %s1136_s22  ;;  %s65_s25 = sadd.s32 1, %s1128_s20  ;;  %s1140_s23 = sphi %s1197_s23, %s20_s23   ;;  %s1136_s22 = sphi %s1195_s22, %s1490_s22   ;;  %s1132_s21 = sphi %s1193_s21, %s1489_s21   ;;  %s1128_s20 = sphi %s1191_s20, %s1488_s20   ;;  %s1124_s19 = sphi %s1189_s19, %s1487_s19   ;;  %s1120_s18 = sphi %s1187_s18, %s1486_s18  }
   0x9   : > { %p30_p0 = scmp.ge.s32.totalorder %s29_s24, 2  ;;  %p72_p1 = scmp.ne.s32.totalorder %s1128_s20, %s1124_s19 }
   0xa   : > { %p73_p2 = scmp.eq.s32.totalorder %s1140_s23, 0  ;;  %p862_p4 = scmp.lt.s32.totalorder %s1140_s23, 2 }
   0xb   : > { %s1492_s24 = smov (%p30_p0, %s29_s24), 0  ;;  %s220_s27 = sand.u32 1, %s1140_s23  }
   0xc   : > { %p74_p3 = por %p73_p2, %p72_p1  ;;  %s62_s26 = ssub.s32 %s1136_s22, %s1492_s24 }
   0xd   : > { %p63_p5 = scmp.eq.s32.totalorder %s62_s26, 0  ;;  %s222_s28 = sand.u32 1, %s1128_s20  }
   0xe   : > { %s807_s29 = sshll.u32 %s1136_s22, 7  ;;  %s762_s6 = sshll.u32 %s222_s28, 7 }
   0xf   : > { %s1231_s30 = scalar_select %p63_p5, %s1128_s20, %s65_s25  }
  0x10   : > { %s1474_s1 = sld [smem:[#allocation13_spill]]  ;;  %p1240_p6 = pnand %p862_p4, %p74_p3 }
  0x11   : > { %s224_s11 = scalar_lea.vmem [#allocation6], %s762_s6  ;;  %s1246_s13 = scalar_lea.sflag [#allocation7], %s220_s27 }
  0x12   : > { %s1475_s10 = scalar_select %p1240_p6, 1, 0 }
  0x13   : > { %s231_s12 = sshll.u32 %s224_s11, 4  ;;  %p1468_p8 = pneg %p1240_p6  ;;  %s1244_s12 = int_to_ptr.vmem [resolvable:$true] %s231_s12 }
  0x16   : > { %s1238_s9 = scalar_lea.hbm %s1474_s1, %s807_s29  ;;  %s973_s17 = scalar_lea.hbm %s1474_s1, 4096 }
  0x17   : > { %s968_s14 = scalar_lea.hbm %s1238_s9, 2048  ;;  %p974_p11 = scmp.lt.u32.totalorder %s1238_s9, %s1474_s1 }
  0x18   : > { %p969_p7 = scmp.ne.s32.totalorder %s1238_s9, %s968_s14  ;;  %p975_p12 = scmp.lt.u32.totalorder %s973_s17, %s968_s14 }
  0x19   : > { %p977_p0 = scmp.lt.u32.totalorder %s968_s14, %s1238_s9 }
  0x1a   : > { %p971_p9 = pnand %p1468_p8, %p969_p7  ;;  %p976_p13 = por %p975_p12, %p974_p11 }
  0x1c   : > { %p972_p10 = pneg %p971_p9  ;;  %p978_p1 = por %p977_p0, %p976_p13 }
  0x1e   : > { %p979_p2 = pnand %p978_p1, %p972_p10 }
  0x20   : > { %982 = shalt.err (!%p979_p2)
}
  0x21   : > { %s983_s27 = scalar_lea.vmem %s1244_s12, 2048  ;;  %s1142_s29 = smov [#allocation6]  }
  0x22   : > { %p984_p3 = scmp.ne.s32.totalorder %s1244_s12, %s983_s27  ;;  %s988_s6 = sshll.u32 %s1142_s29, 4  ;;  %s989_s6 = int_to_ptr.vmem [resolvable:$false] %s988_s6 }
  0x23   : > { %s990_s7 = scalar_lea.vmem %s989_s6, 4096  ;;  %p991_p7 = scmp.lt.s32.totalorder %s1244_s12, %s989_s6 }
  0x24   : > { %p986_p4 = pnand %p984_p3, %p1468_p8  ;;  %p992_p9 = scmp.lt.s32.totalorder %s990_s7, %s983_s27 }
  0x26   : > { %p987_p5 = pneg %p986_p4  ;;  %p993_p11 = por %p992_p9, %p991_p7 }
  0x28   : > { %p994_p12 = pnand %p993_p11, %p987_p5 }
  0x2a   : > { %997 = shalt.err (!%p994_p12)
}
  0x2b   : > { %s1143_s8 = smov 256   ;;  %s1144_s11 = smov 128  }
  0x2c   : > { %s1145_s14 = smov 8   ;;  %s1275_s15 = sadd.s32 4294967295, %s1140_s23  }
  0x2d   : > { %857 = dma.hbm_to_vmem [thread:$0]  (!%p1240_p6), %s1238_s9, 2048, %s1244_s12, %s1246_s13, %s1143_s8, %s1144_s11, %s1145_s14  }
  0x2e   : > { %p78_p10 = scmp.ne.s32.totalorder %s1124_s19, %s1120_s18  ;;  %p1467_p13 = scmp.eq.s32.totalorder %s1275_s15, 0 }
  0x2f   : > { %p759_p0 = scmp.ge.s32.totalorder %s1140_s23, 1  ;;  %p188_p1 = scmp.lt.s32.totalorder %s1140_s23, 3 }
  0x30   : > { %p1284_p2 = por %p1467_p13, %p78_p10  ;;  %s1146_s9 = smov [#allocation3]  }
  0x31   : > { %p1288_p3 = pnand %p759_p0, %p188_p1  ;;  %s203_s12 = sshll.u32 %s1146_s9, 4  ;;  %s1292_s12 = int_to_ptr.vmem [resolvable:$true] %s203_s12 }
  0x32   : > { %s1476_s16 = scalar_select %p1284_p2, 1, 0 }
  0x33   : > { %s1477_s17 = scalar_select %p1288_p3, 1, 0 }
  0x34   : > { %p850_p4 = pneg %p1288_p3  ;;  %s765_s18 = sshll.u32 %s222_s28, 6 }
  0x35   : > { %s808_s25 = sshll.u32 %s1136_s22, 10  ;;  %s253_s7 = scalar_lea.vmem [#allocation8], %s765_s18 }
  0x36   : > { %p1301_p5 = pnand %p850_p4, %p1467_p13  ;;  %s1308_s6 = scalar_lea.hbm %s1464_s3, %s808_s25 }
  0x37   : > { %s260_s8 = sshll.u32 %s253_s7, 4  ;;  %s998_s28 = scalar_lea.hbm %s1461_s0, 128  ;;  %s1310_s8 = int_to_ptr.vmem [resolvable:$true] %s260_s8 }
  0x38   : > { %p999_p7 = scmp.ne.s32.totalorder %s1461_s0, %s998_s28  ;;  %p1000_p9 = pneg %p1301_p5 }
  0x39   : > { %p1005_p10 = scmp.lt.u32.totalorder %s998_s28, %s1461_s0 }
  0x3a   : > { %p1001_p11 = pnand %p1000_p9, %p999_p7 }
  0x3c   : > { %p1002_p12 = pneg %p1001_p11 }
  0x3e   : > { %p1007_p0 = pnand %p1005_p10, %p1002_p12 }
  0x40   : > { %1010 = shalt.err (!%p1007_p0)
}
  0x41   : > { %s1011_s18 = scalar_lea.vmem %s1292_s12, 128  ;;  %p1019_p8 = scmp.lt.s32.totalorder %s1292_s12, %s1292_s12 }
  0x42   : > { %p1012_p1 = scmp.ne.s32.totalorder %s1292_s12, %s1011_s18  ;;  %p1020_p2 = scmp.lt.s32.totalorder %s1011_s18, %s1011_s18 }
  0x44   : > { %p1014_p4 = pnand %p1012_p1, %p1000_p9  ;;  %p1021_p3 = por %p1020_p2, %p1019_p8 }
  0x46   : > { %p1015_p13 = pneg %p1014_p4 }
  0x48   : > { %p1022_p6 = pnand %p1021_p3, %p1015_p13 }
  0x4a   : > { %1025 = shalt.err (!%p1022_p6)
}
  0x4b   : > { %s1147_s1 = smov 64   ;;  %s1148_s25 = smov 4  }
  0x4c   : > { %853 = dma.hbm_to_vmem [thread:$0]  (!%p1301_p5), %s1461_s0, 128, %s1292_s12, [#allocation4], %s1147_s1, %s1147_s1, %s1148_s25  }
  0x4d   : > { %s1026_s14 = scalar_lea.hbm %s1308_s6, 1024  ;;  %p1479_p6 = scmp.ne.s32.totalorder %s1475_s10, 0 }
  0x4e   : > { %p1027_p8 = scmp.ne.s32.totalorder %s1308_s6, %s1026_s14  ;;  %s1031_s27 = scalar_lea.hbm %s1464_s3, 2048 }
  0x4f   : > { %p1480_p13 = pneg %p1479_p6  ;;  %p1032_p7 = scmp.lt.u32.totalorder %s1308_s6, %s1464_s3 }
  0x50   : > { %p1033_p9 = scmp.lt.u32.totalorder %s1031_s27, %s1026_s14  ;;  %p1035_p12 = scmp.lt.u32.totalorder %s1026_s14, %s1308_s6 }
  0x51   : > { %p1029_p2 = pnand %p1027_p8, %p1480_p13 }
  0x52   : > { %p1034_p11 = por %p1033_p9, %p1032_p7 }
  0x53   : > { %p1030_p3 = pneg %p1029_p2 }
  0x54   : > { %p1036_p10 = por %p1035_p12, %p1034_p11 }
  0x56   : > { %p1037_p0 = pnand %p1036_p10, %p1030_p3 }
  0x58   : > { %1040 = shalt.err (!%p1037_p0)
}
  0x59   : > { %s1041_s12 = scalar_lea.vmem %s1310_s8, 1024  ;;  %p1481_p1 = pmov %p1480_p13 }
  0x5a   : > { %p1042_p5 = scmp.ne.s32.totalorder %s1310_s8, %s1041_s12  ;;  %s1149_s26 = smov [#allocation8]  }
  0x5b   : > { %s1046_s7 = sshll.u32 %s1149_s26, 4  ;;  %s1047_s7 = int_to_ptr.vmem [resolvable:$false] %s1046_s7 }
  0x5c   : > { %p1044_p4 = pnand %p1042_p5, %p1481_p1  ;;  %s1048_s11 = scalar_lea.vmem %s1047_s7, 2048 }
  0x5d   : > { %p1049_p13 = scmp.lt.s32.totalorder %s1310_s8, %s1047_s7  ;;  %p1050_p2 = scmp.lt.s32.totalorder %s1048_s11, %s1041_s12 }
  0x5e   : > { %p1045_p8 = pneg %p1044_p4 }
  0x5f   : > { %p1051_p7 = por %p1050_p2, %p1049_p13 }
  0x61   : > { %p1052_p9 = pnand %p1051_p7, %p1045_p8 }
  0x63   : > { %1055 = shalt.err (!%p1052_p9)
}
  0x64   : > { %860 = dma.hbm_to_vmem [thread:$0]  (!%p1479_p6), %s1308_s6, 1024, %s1310_s8, %s1246_s13, %s1147_s1, %s1147_s1, %s1148_s25  }
  0x65   : > { %p1482_p3 = scmp.ne.s32.totalorder %s1477_s17, 0 }
  0x66   : > { %p1483_p11 = scmp.eq.s32.totalorder (!%p1482_p3), %s1275_s15, 0 }
  0x67   : > { %272 = sbr.rel (%p1482_p3) target bundleno = 661 (0x295), region = 40 }
  0x6e   : > { %1107 = dma.done.wait (%p1483_p11), [#allocation4], 128   ;;  %p1484_p12 = pmov %p1483_p11 }
  0x6f   : > { %s278_s10 = sand.u32 1, %s1275_s15   ;;  %s280_s14 = sand.u32 1, %s1124_s19  }
  0x70   : > { %1109 = vsyncadd (%p1484_p12), [#allocation4], 4294967168  ;;  %s770_s28 = sshll.u32 %s280_s14, 7  ;;  %s279_s9 = scalar_lea.sflag [#allocation7], %s278_s10 }
  0x71   : > { %s1371_s27 = scalar_lea.vmem [#allocation6], %s770_s28  ;;  %p1485_p10 = scmp.ne.s32.totalorder %s1476_s16, 0 }
  0x73   : > { %1111 = dma.done.wait (%p1485_p10), %s279_s9, 3072  }
  0x74   : > { %1113 = vsyncadd (%p1485_p10), %s279_s9, 4294964224  ;;  %s771_s13 = sshll.u32 %s280_s14, 6  ;;  %s772_s17 = sshll.u32 %s1132_s21, 1 }
  0x75   : > { %p325_p6 = scmp.lt.s32.totalorder %s772_s17, 3  ;;  %s1384_s25 = scalar_lea.vmem [#allocation8], %s771_s13 }
  0x76   : > { %p773_p0 = scmp.ne.s32.totalorder %s1132_s21, 0 }
  0x77   : > { %s1494_s17 = smov (!%p325_p6, %s772_s17), 3  ;;  %v1150_v0 = vmov (!%p773_p0), 0.0  }
  0x78   : > { %s327_s1 = scalar_lea.vmem %s1463_s2, %s1494_s17  ;;  %335 = sbr.rel (%p773_p0) target bundleno = 127 (0x7f), region = 56  ;;  %336 = vst [vmem:[#allocation2] sm:$0xff] (!%p773_p0), %v1150_v0  ;;  %337 = vst [vmem:[#allocation2 + $0x8] sm:$0xff] (!%p773_p0), %v1150_v0 }
  0x7f PF: > { %v927_v1 = vld [vmem:[%s1371_s27 + $0x4] ss:$8 sps:$4 sm:$0xff]   ;;  %v929_v2 = vld [vmem:[%s1371_s27] ss:$8 sps:$4 sm:$0xff]   ;;  %v1151_v3 = vmov 0   ;;  %v951_v18 = vld [vmem:[#allocation3] sm:$0xff]   ;;  %v358_v28 = vlaneseq }
  0x80   : > { %486 = vmatprep.mubr.bf16.mxu0 %v1151_v3  ;;  %454 = vmatprep.subr.bf16.mxu0 %v927_v1  ;;  %v930_v4 = vld [vmem:[%s1371_s27 + $0x14] ss:$8 sps:$4 sm:$0xff]   ;;  %v932_v5 = vld [vmem:[%s1371_s27 + $0x10] ss:$8 sps:$4 sm:$0xff]   ;;  %v933_v6 = vld [vmem:[%s1371_s27 + $0x24] ss:$8 sps:$4 sm:$0xff]  }
  0x81   : > { %455 = vmatpush1.bf16.msra.mxu0 %v929_v2  ;;  %v935_v7 = vld [vmem:[%s1371_s27 + $0x20] ss:$8 sps:$4 sm:$0xff]   ;;  %v936_v8 = vld [vmem:[%s1371_s27 + $0x34] ss:$8 sps:$4 sm:$0xff]   ;;  %v938_v9 = vld [vmem:[%s1371_s27 + $0x30] ss:$8 sps:$4 sm:$0xff]  }
  0x82   : > { %456 = vmatprep.subr.bf16.mxu0 %v930_v4  ;;  %v939_v10 = vld [vmem:[%s1371_s27 + $0x44] ss:$8 sps:$4 sm:$0xff]   ;;  %v941_v11 = vld [vmem:[%s1371_s27 + $0x40] ss:$8 sps:$4 sm:$0xff]   ;;  %v942_v12 = vld [vmem:[%s1371_s27 + $0x54] ss:$8 sps:$4 sm:$0xff]  }
  0x83   : > { %v944_v13 = vld [vmem:[%s1371_s27 + $0x50] ss:$8 sps:$4 sm:$0xff]   ;;  %v945_v14 = vld [vmem:[%s1371_s27 + $0x64] ss:$8 sps:$4 sm:$0xff]   ;;  %v947_v15 = vld [vmem:[%s1371_s27 + $0x60] ss:$8 sps:$4 sm:$0xff]  }
  0x84   : > { %v948_v16 = vld [vmem:[%s1371_s27 + $0x74] ss:$8 sps:$4 sm:$0xff]   ;;  %v950_v17 = vld [vmem:[%s1371_s27 + $0x70] ss:$8 sps:$4 sm:$0xff]   ;;  %v952_v19 = vld [vmem:[%s1384_s25] sm:$0xff]   ;;  %v1152_v20 = vmov 0.0  }
  0x85   : > { %457 = vmatpush1.bf16.msra.mxu0 %v932_v5  ;;  %818 = vmatprep.subr.bf16.mxu1 %v1152_v20  ;;  %v953_v21 = vld [vmem:[%s1384_s25 + $0x8] sm:$0xff]   ;;  %v954_v22 = vld [vmem:[%s1384_s25 + $0x10] sm:$0xff]   ;;  %v955_v23 = vld [vmem:[%s1384_s25 + $0x18] sm:$0xff]   ;;  %vm1153_vm0 = vmmov 0   ;;  %v359_v29 = vshrl.u32 %v358_v28, 7  ;;  %p801_p5 = scmp.ne.s32.totalorder %s1132_s21, 1 }
  0x86   : > { %458 = vmatprep.subr.bf16.mxu0 %v933_v6  ;;  %819 = vmatpush3.bf16.msra.mxu1 %v952_v19  ;;  %v956_v24 = vld [vmem:[%s1384_s25 + $0x20] sm:$0xff]   ;;  %v957_v25 = vld [vmem:[%s1384_s25 + $0x28] sm:$0xff]   ;;  %v958_v26 = vld [vmem:[%s1384_s25 + $0x30] sm:$0xff]  }
  0x87   : > { %820 = vmatprep.subr.bf16.mxu1 %v1152_v20  ;;  %v959_v27 = vld [vmem:[%s1384_s25 + $0x38] sm:$0xff]   ;;  %834 = vmatprep.mubr.msk.bf16.mxu1 %vm1153_vm0, %v1152_v20  ;;  %v360_v30 = vsub.s32 0, %v359_v29  ;;  %v356_v31 = vld [vmem:[%s327_s1] sm:$0x3]  ;;  %v364_v45 = vsub.s32 1, %v359_v29  ;;  %v514_v58 = vld [vmem:[#allocation2 + $0x8] sm:$0xff] }
  0x88   : > { %v513_v56 = vld [vmem:[#allocation2] sm:$0xff] }
  0x89   : > { %459 = vmatpush1.bf16.msra.mxu0 %v935_v7  ;;  %v361_v32 = vrot.slane %v356_v31, %v360_v30  ;;  %v365_v46 = vrot.slane %v356_v31, %v364_v45  ;;  %v802_v1 = vld [vmem:[%s1465_s4] ss:$0 sm:$0xff] (!%p801_p5) }
  0x8a   : > { %460 = vmatprep.subr.bf16.mxu0 %v936_v8  ;;  %821 = vmatpush3.bf16.msra.mxu1 %v953_v21 }
  0x8b   : > { %822 = vmatprep.subr.bf16.mxu1 %v1152_v20 }
  0x8d   : > { %461 = vmatpush1.bf16.msra.mxu0 %v938_v9 }
  0x8e   : > { %462 = vmatprep.subr.bf16.mxu0 %v939_v10  ;;  %823 = vmatpush3.bf16.msra.mxu1 %v954_v22 }
  0x8f   : > { %824 = vmatprep.subr.bf16.mxu1 %v1152_v20 }
  0x91   : > { %463 = vmatpush1.bf16.msra.mxu0 %v941_v11 }
  0x92   : > { %464 = vmatprep.subr.bf16.mxu0 %v942_v12  ;;  %825 = vmatpush3.bf16.msra.mxu1 %v955_v23 }
  0x93   : > { %826 = vmatprep.subr.bf16.mxu1 %v1152_v20 }
  0x95   : > { %465 = vmatpush1.bf16.msra.mxu0 %v944_v13 }
  0x96   : > { %466 = vmatprep.subr.bf16.mxu0 %v945_v14  ;;  %827 = vmatpush3.bf16.msra.mxu1 %v956_v24 }
  0x97   : > { %828 = vmatprep.subr.bf16.mxu1 %v1152_v20 }
  0x99   : > { %467 = vmatpush1.bf16.msra.mxu0 %v947_v15 }
  0x9a   : > { %468 = vmatprep.subr.bf16.mxu0 %v948_v16  ;;  %829 = vmatpush3.bf16.msra.mxu1 %v957_v25 }
  0x9b   : > { %830 = vmatprep.subr.bf16.mxu1 %v1152_v20 }
  0x9d   : > { %469 = vmatpush1.bf16.msra.mxu0 %v950_v17 }
  0x9e   : > { %831 = vmatpush3.bf16.msra.mxu1 %v958_v26 }
  0x9f   : > { %832 = vmatprep.subr.bf16.mxu1 %v1152_v20 }
  0xa0   : > { %487 = vmatmul.mubr.bf16.vlgmr.msra.gmra.mrb[0].mxu0 %v951_v18 }
  0xa2   : > { %833 = vmatpush3.bf16.msra.mxu1 %v959_v27 }
 0x173   : > { %v488_v33 = vpop.f32.mrb[0].mxu0 }
 0x174   : > { %v489_v34 = vadd.f32 %v488_v33, %v361_v32  ;;  %v490_v35 = vpop.f32.mrb[1].mxu0 }
 0x175   : > { %v492_v36 = vpop.f32.mrb[2].mxu0  ;;  %v491_v49 = vadd.f32 %v490_v35, %v365_v46 }
 0x176   : > { %v791_v37 = vmul.f32 -1.442695, %v489_v34  ;;  %v493_v38 = vadd.f32 %v492_v36, %v361_v32  ;;  %v494_v39 = vpop.f32.mrb[3].mxu0 }
 0x177   : > { %v495_v53 = vadd.f32 %v494_v39, %v365_v46 }
 0x178   : > { %960 = vpow2.f32 %v791_v37  ;;  %v792_v40 = vmul.f32 -1.442695, %v493_v38 }
 0x17a   : > { %962 = vpow2.f32 %v792_v40 }
 0x182   : > { %v961_v41 = vpop.eup %960 }
 0x183   : > { %v503_v42 = vadd.f32 1.0, %v961_v41 }
 0x184   : > { %v963_v43 = vpop.eup %962 }
 0x185   : > { %964 = vrcp.f32 %v503_v42  ;;  %v504_v44 = vadd.f32 1.0, %v963_v43 }
 0x187   : > { %966 = vrcp.f32 %v504_v44 }
 0x18f   : > { %v965_v47 = vpop.eup %964 }
 0x190   : > { %v509_v48 = vmul.f32 %v965_v47, %v489_v34 }
 0x191   : > { %v967_v50 = vpop.eup %966 }
 0x192   : > { %v511_v51 = vmul.f32 %v509_v48, %v491_v49  ;;  %v510_v52 = vmul.f32 %v967_v50, %v493_v38 }
 0x194   : > { %v512_v54 = vmul.f32 %v510_v52, %v495_v53 }
 0x196   : > { %v515_v55 = vpack.c.bf16 %v512_v54, %v511_v51 }
 0x198   : > { %835 = vmatmul.mubr.bf16.vlgmr.msra.gmra.mrb[0].mxu1 %v515_v55 }
 0x26a   : > { %628 = sbr.rel (%p801_p5) target bundleno = 635 (0x27b), region = 60 }
 0x26b   : > { %v614_v57 = vpop.f32.mrb[0].mxu1 }
 0x26c   : > { %v621_v59 = vadd.f32 %v614_v57, %v513_v56  ;;  %v836_v60 = vpop.f32.mrb[1].mxu1 }
 0x26d   : > { %v617_v61 = vpop.f32.mrb[2].mxu1 }
 0x26e   : > { %623 = vst [vmem:[#allocation2] sm:$0xff] %v621_v59  ;;  %v622_v62 = vadd.f32 %v617_v61, %v514_v58  ;;  %v837_v63 = vpop.f32.mrb[3].mxu1 }
 0x270   : > { %624 = vst [vmem:[#allocation2 + $0x8] sm:$0xff] %v622_v62 }
 0x275   : > { %v629_v0 = vld [vmem:[#allocation2] sm:$0xff] }
 0x276   : > { %v638_v3 = vadd.f32 %v802_v1, %v629_v0 }
 0x277   : > { %v630_v2 = vld [vmem:[#allocation2 + $0x8] sm:$0xff] }
 0x278   : > { %v639_v4 = vadd.f32 %v802_v1, %v630_v2  ;;  %640 = vst [vmem:[#allocation9] sm:$0xff] %v638_v3 }
 0x27a   : > { %641 = vst [vmem:[#allocation9 + $0x8] sm:$0xff] %v639_v4 }
 0x27b PF: > { %p864_p1 = scmp.eq.s32.totalorder %s1275_s15, 1  ;;  %s1154_s26 = smov [#allocation9]  }
 0x27c   : > { %s651_s7 = sshll.u32 %s1154_s26, 4  ;;  %s652_s7 = int_to_ptr.vmem [resolvable:$true] %s651_s7 }
 0x27d   : > { %s1056_s11 = scalar_lea.vmem %s652_s7, 256  ;;  %p1063_p2 = scmp.lt.s32.totalorder %s652_s7, %s652_s7 }
 0x27e   : > { %p1057_p4 = scmp.ne.s32.totalorder %s652_s7, %s1056_s11  ;;  %p1064_p7 = scmp.lt.s32.totalorder %s1056_s11, %s1056_s11 }
 0x280   : > { %p1058_p8 = pnand %p1057_p4, %p864_p1  ;;  %p1065_p9 = por %p1064_p7, %p1063_p2 }
 0x282   : > { %p1059_p13 = pneg %p1058_p8 }
 0x284   : > { %p1066_p3 = pnand %p1065_p9, %p1059_p13 }
 0x286   : > { %1069 = shalt.err (!%p1066_p3)
}
 0x287   : > { %s1070_s14 = scalar_lea.hbm %s1466_s5, 256 }
 0x288   : > { %p1071_p11 = scmp.ne.s32.totalorder %s1466_s5, %s1070_s14  ;;  %p1076_p6 = scmp.lt.u32.totalorder %s1070_s14, %s1466_s5 }
 0x28a   : > { %p1072_p12 = pnand %p1071_p11, %p864_p1 }
 0x28c   : > { %p1073_p10 = pneg %p1072_p12 }
 0x28e   : > { %p1078_p0 = pnand %p1076_p6, %p1073_p10 }
 0x290   : > { %1081 = shalt.err (!%p1078_p0)
}
 0x291   : > { %s1155_s17 = smov 128   ;;  %s1156_s6 = smov 8  }
 0x292   : > { %847 = dma.vmem_to_hbm [thread:$0]  (%p864_p1), %s652_s7, 256, %s1466_s5, [#allocation5], %s1155_s17, %s1155_s17, %s1156_s6  }
 0x293   : > { %1115 = dma.done.wait (%p864_p1), [#allocation5], 256  }
 0x294   : > { %1117 = vsyncadd (%p864_p1), [#allocation5], 4294967040 }
 0x295 PF: > { %s20_s23 = sadd.s32 1, %s1140_s23   ;;  %s1486_s18 = smov %s1124_s19 }
 0x296   : > { %p17_p5 = scmp.ge.s32.totalorder %s20_s23, 4   ;;  %s1487_s19 = smov %s1128_s20 }
 0x297   : > { %s1488_s20 = smov %s1231_s30  ;;  %s1489_s21 = smov %s1136_s22 }
 0x298   : > { %s1490_s22 = smov %s1492_s24  ;;  %19 = sbr.rel (!%p17_p5) target bundleno = 8 (0x8), region = 106 }
 0x29f   :  { %667 = vsyncpa [#allocation4], 1 }
 0x2a0   :  { %669 = vsyncpa [#allocation4 + $0x1], 1 }
 0x2a1   :  { %670 = vsyncpa [#allocation7], 1 }
 0x2a2   :  { %672 = vsyncpa [#allocation7 + $0x1], 1 }
 0x2a3   :  { %673 = vsyncpa [#allocation5], 1 }
 0x2a4   :  { %675 = vsyncpa [#allocation5 + $0x1], 1 }

</bundles_post_ra>
